<compile_context>
chip_gen: v7x
topology: tpu7x:2x2x1
jax: 0.10.0
libtpu: 0.0.40
codegen_flags: <defaults>
</compile_context>

<pallas_src>
import functools

import jax
import jax.numpy as jnp
from jax.experimental import pallas as pl
from jax.experimental.pallas import tpu as pltpu

BITS = 8
QUANT_MIN = -(2 ** (BITS - 1)) + 1   # -127 (module's qint8 range helper)
QUANT_MAX = 2 ** (BITS - 1) - 1      # 127
F32_EPS = float(jnp.finfo(jnp.float32).eps)


def _round_up(n, m):
    return ((n + m - 1) // m) * m


def _vmem_capacity_bytes():
    """Best-effort VMEM capacity query; conservative default if unavailable."""
    try:
        info = pltpu.get_tpu_info()
        for attr in ("vmem_capacity_bytes", "vmem_size_bytes", "vmem_bytes"):
            v = getattr(info, attr, None)
            if v:
                return int(v)
    except Exception:
        pass
    return 64 * 1024 * 1024   # v7x per-TC VMEM (smallest generation)


# --------------------- fused kernel (small/medium tensors) --------------------
def _fused_quant_kernel(x_ref, o_ref, min_ref, max_ref, *, quant_min, quant_max):
    """x resident in VMEM: min/max + calculate_qparams + fake-quant in one pass."""
    x = x_ref[...]
    mn = jnp.min(x).astype(jnp.float32)
    mx = jnp.max(x).astype(jnp.float32)
    min_ref[0] = mn
    max_ref[0] = mx
    min_neg = jnp.minimum(mn, jnp.float32(0.0))
    max_pos = jnp.maximum(mx, jnp.float32(0.0))
    scale = jnp.maximum((max_pos - min_neg) / jnp.float32(quant_max - quant_min),
                        jnp.float32(F32_EPS))
    zp = jnp.clip(jnp.float32(quant_min) - jnp.round(min_neg / scale),
                  jnp.float32(quant_min), jnp.float32(quant_max))
    inv_scale = jnp.float32(1.0) / scale
    lo = jnp.float32(quant_min) - zp     # zero-point folded into clamp bounds
    hi = jnp.float32(quant_max) - zp
    q = jnp.clip(jnp.round(x.astype(jnp.float32) * inv_scale), lo, hi)
    o_ref[...] = (q * scale).astype(o_ref.dtype)


# ---------------------- streaming pass 1: observer (min/max) ------------------
def _minmax_kernel(x_ref, pmin_ref, pmax_ref, *, rows, row_tile, need_mask):
    """Per-block (8, W) partial min/max, native dtype, no scratch carry."""
    x = x_ref[...]                                        # (row_tile, W)
    if need_mask:
        i = pl.program_id(0)
        valid = rows - i * row_tile                       # >= 1 on the last block
        ridx = jax.lax.broadcasted_iota(jnp.int32, x.shape, 0)
        ok = ridx < valid
        pos_inf = jnp.array(jnp.inf, dtype=x.dtype)
        x_min_src = jnp.where(ok, x, pos_inf)
        x_max_src = jnp.where(ok, x, -pos_inf)
    else:
        x_min_src = x
        x_max_src = x
    r, w = x.shape
    pmin_ref[0] = jnp.min(x_min_src.reshape(r // 8, 8, w), axis=0)   # VPU only
    pmax_ref[0] = jnp.max(x_max_src.reshape(r // 8, 8, w), axis=0)


# ---------------------- streaming pass 2: fake quantization -------------------
def _fake_quant_kernel(params_ref, x_ref, o_ref):
    """fake_quantize_per_tensor_affine with zp folded into the clamp bounds."""
    inv_scale = params_ref[0]
    scale = params_ref[1]
    lo = params_ref[2]
    hi = params_ref[3]
    q = jnp.clip(jnp.round(x_ref[...].astype(jnp.float32) * inv_scale), lo, hi)
    o_ref[...] = (q * scale).astype(o_ref.dtype)


# --------------------------------- wrapper ------------------------------------
def activation_quantizer_forward(x, *, row_tile=None, fused_bytes_cap=None):
    """Eval-mode ActivationQuantizer forward: observe then fake-quantize.

    Returns (fake_quantized_x, observed_min, observed_max).  The returned
    min/max are the raw tensor extrema (observer state), not the zero-clamped
    values used internally for scale/zero_point.
    """
    orig_shape = x.shape
    orig_dtype = x.dtype
    n = int(x.size)
    if n == 0:   # degenerate: nothing to observe/quantize
        return x, jnp.float32(jnp.inf), jnp.float32(-jnp.inf)

    itemsize = jnp.dtype(orig_dtype).itemsize

    # Lane-dense slab.  Zero-copy (pure reshape) whenever numel % 128 == 0.
    pad = 0
    lane = 128
    for w in (512, 256, 128):
        if n % w == 0:
            lane = w
            break
    else:
        pad = (-n) % 128     # rare fallback: tiny edge-pad (preserves min/max)

    flat = x.reshape(-1)
    if pad:
        flat = jnp.pad(flat, (0, pad), mode="edge")
    rows = (n + pad) // lane
    x2d = flat.reshape(rows, lane)

    # Generation-aware budgets.
    vmem_cap = _vmem_capacity_bytes()
    vmem_limit = max(32 << 20, min((vmem_cap * 3) // 4, 96 << 20))
    slab_bytes = rows * lane * itemsize
    if fused_bytes_cap is None:
        fused_bytes_cap = vmem_limit // 8

    if slab_bytes <= fused_bytes_cap:
        # -------- small/medium tensors: one kernel, x read from HBM once.
        out2d, min_val, max_val = pl.pallas_call(
            functools.partial(_fused_quant_kernel,
                              quant_min=QUANT_MIN, quant_max=QUANT_MAX),
            out_shape=(jax.ShapeDtypeStruct(x2d.shape, orig_dtype),
                       jax.ShapeDtypeStruct((1,), jnp.float32),
                       jax.ShapeDtypeStruct((1,), jnp.float32)),
            grid=(1,),
            in_specs=[pl.BlockSpec((rows, lane), lambda i: (0, 0))],
            out_specs=(pl.BlockSpec((rows, lane), lambda i: (0, 0)),
                       pl.BlockSpec(memory_space=pltpu.MemorySpace.SMEM),
                       pl.BlockSpec(memory_space=pltpu.MemorySpace.SMEM)),
            compiler_params=pltpu.CompilerParams(
                dimension_semantics=("arbitrary",),
                vmem_limit_bytes=vmem_limit),
        )(x2d)
        min_val = min_val[0]
        max_val = max_val[0]
    else:
        # -------- large tensors: two HBM-bound streaming passes.
        if row_tile is None:
            block_bytes = max(vmem_limit // 6, 1 << 20)   # ~8 MiB v7x, ~16 MiB v6e
            row_tile = block_bytes // (lane * itemsize)
        row_tile = max(8, (int(row_tile) // 8) * 8)
        row_tile = min(row_tile, _round_up(rows, 8))
        nblk = pl.cdiv(rows, row_tile)
        grid = (nblk,)
        need_mask = (rows % row_tile) != 0

        # Pass 1: observer.  Each block writes its own (8, lane) partial on a
        # "parallel" axis (megacore-friendly); final reduce is tiny.
        pmin, pmax = pl.pallas_call(
            functools.partial(_minmax_kernel, rows=rows, row_tile=row_tile,
                              need_mask=need_mask),
            out_shape=(jax.ShapeDtypeStruct((nblk, 8, lane), orig_dtype),
                       jax.ShapeDtypeStruct((nblk, 8, lane), orig_dtype)),
            grid=grid,
            in_specs=[pl.BlockSpec((row_tile, lane), lambda i: (i, 0))],
            out_specs=(pl.BlockSpec((1, 8, lane), lambda i: (i, 0, 0)),
                       pl.BlockSpec((1, 8, lane), lambda i: (i, 0, 0))),
            compiler_params=pltpu.CompilerParams(
                dimension_semantics=("parallel",),
                vmem_limit_bytes=vmem_limit),
        )(x2d)
        min_val = jnp.min(pmin).astype(jnp.float32)
        max_val = jnp.max(pmax).astype(jnp.float32)

        # calculate_qparams on scalars (hoisted out of the per-tile kernel).
        min_neg = jnp.minimum(min_val, jnp.float32(0.0))
        max_pos = jnp.maximum(max_val, jnp.float32(0.0))
        scale = jnp.maximum(
            (max_pos - min_neg) / jnp.float32(QUANT_MAX - QUANT_MIN),
            jnp.float32(F32_EPS))
        zp = jnp.clip(jnp.float32(QUANT_MIN) - jnp.round(min_neg / scale),
                      jnp.float32(QUANT_MIN), jnp.float32(QUANT_MAX))
        params = jnp.stack([jnp.float32(1.0) / scale,
                            scale,
                            jnp.float32(QUANT_MIN) - zp,
                            jnp.float32(QUANT_MAX) - zp]).astype(jnp.float32)

        # Pass 2: fake quantization (elementwise, "parallel").
        out2d = pl.pallas_call(
            _fake_quant_kernel,
            out_shape=jax.ShapeDtypeStruct(x2d.shape, orig_dtype),
            grid=grid,
            in_specs=[pl.BlockSpec(memory_space=pltpu.MemorySpace.SMEM),
                      pl.BlockSpec((row_tile, lane), lambda i: (i, 0))],
            out_specs=pl.BlockSpec((row_tile, lane), lambda i: (i, 0)),
            compiler_params=pltpu.CompilerParams(
                dimension_semantics=("parallel",),
                vmem_limit_bytes=vmem_limit),
        )(params, x2d)

    if pad:
        out = out2d.reshape(-1)[:n].reshape(orig_shape)
    else:
        out = out2d.reshape(orig_shape)
    return out, min_val, max_val


# ------------------------------ pure-JAX reference -----------------------------
def _reference(x):
    xf = x.astype(jnp.float32)
    min_neg = jnp.minimum(jnp.min(xf), 0.0)
    max_pos = jnp.maximum(jnp.max(xf), 0.0)
    scale = jnp.maximum((max_pos - min_neg) / float(QUANT_MAX - QUANT_MIN), F32_EPS)
    zp = jnp.clip(QUANT_MIN - jnp.round(min_neg / scale), QUANT_MIN, QUANT_MAX)
    q = jnp.clip(jnp.round(xf / scale) + zp, QUANT_MIN, QUANT_MAX)
    return ((q - zp) * scale).astype(x.dtype)


# TODO(synk): training-mode passthrough, get_run_ctx gating, MovingAverage
# observer EMA state and the per_channel method are host-side module state;
# only the eval-mode per_tensor observe+fake-quant path is implemented here.

if __name__ == "__main__":
    key = jax.random.PRNGKey(0)

    # activations: batch=2, seq=8, hidden=32  (fused single-kernel fast path)
    x = jax.random.normal(key, (2, 8, 32), dtype=jnp.float32) * 3.0
    out, mn, mx = activation_quantizer_forward(x)
    out = jax.block_until_ready(out)
    assert out.shape == x.shape and out.dtype == x.dtype
    ref = _reference(x)
    assert jnp.allclose(out, ref, atol=1e-5), float(jnp.max(jnp.abs(out - ref)))
    assert jnp.allclose(mn, jnp.min(x)) and jnp.allclose(mx, jnp.max(x))

    # Exercise the streaming two-pass path: ragged grid + masked observer +
    # megacore-parallel partials + SMEM qparams (force by disabling fast path).
    x2 = jax.random.normal(jax.random.PRNGKey(1), (2, 200, 384), dtype=jnp.float32)
    out2, mn2, mx2 = activation_quantizer_forward(x2, row_tile=128, fused_bytes_cap=0)
    out2 = jax.block_until_ready(out2)
    ref2 = _reference(x2)
    assert jnp.allclose(out2, ref2, atol=1e-5), float(jnp.max(jnp.abs(out2 - ref2)))
    assert jnp.allclose(mn2, jnp.min(x2)) and jnp.allclose(mx2, jnp.max(x2))

    # Exercise the non-multiple-of-128 fallback (tiny edge pad).
    x3 = jax.random.normal(jax.random.PRNGKey(2), (3, 7, 33), dtype=jnp.float32)
    out3, mn3, mx3 = activation_quantizer_forward(x3)
    out3 = jax.block_until_ready(out3)
    ref3 = _reference(x3)
    assert jnp.allclose(out3, ref3, atol=1e-5), float(jnp.max(jnp.abs(out3 - ref3)))
    assert jnp.allclose(mn3, jnp.min(x3)) and jnp.allclose(mx3, jnp.max(x3))

    print("KERNEL_OK")
</pallas_src>

<mosaic_0001>
module attributes {stable_mosaic.version = 11 : i64} {
  func.func @_fused_quant_kernel(%arg0: i32, %arg1: memref<1x512xf32, #tpu.memory_space<vmem>>, %arg2: memref<1x512xf32, #tpu.memory_space<vmem>>, %arg3: memref<1xf32, #tpu.memory_space<smem>>, %arg4: memref<1xf32, #tpu.memory_space<smem>>) attributes {dimension_semantics = [#tpu.dimension_semantics<arbitrary>], iteration_bounds = array<i64: 1>, scalar_prefetch = 0 : i64, scratch_operands = 0 : i64, tpu.core_type = #tpu.core_type<tc>, window_params = [{pipeline_mode = #tpu.pipeline_mode<synchronous>, transform_indices = @transform_0, window_bounds = array<i64: 1, 512>}, {pipeline_mode = #tpu.pipeline_mode<synchronous>, transform_indices = @transform_1, window_bounds = array<i64: 1, 512>}, {transform_indices = @transform_2, window_bounds = array<i64: 1>}, {transform_indices = @transform_3, window_bounds = array<i64: 1>}]} {
    %c0 = arith.constant 0 : index
    %c0_0 = arith.constant 0 : index
    %0 = vector.load %arg1[%c0, %c0_0] : memref<1x512xf32, #tpu.memory_space<vmem>>, vector<1x512xf32>
    %1 = vector.shape_cast %0 : vector<1x512xf32> to vector<1x1x512xf32>
    %cst = arith.constant dense<0x7F800000> : vector<1xf32>
    %2 = vector.multi_reduction <minimumf>, %1, %cst [1, 2] : vector<1x1x512xf32> to vector<1xf32>
    %3 = vector.shape_cast %2 : vector<1xf32> to vector<1x1x1xf32>
    %4 = vector.extract %3[0, 0, 0] : f32 from vector<1x1x1xf32>
    %5 = vector.shape_cast %0 : vector<1x512xf32> to vector<1x1x512xf32>
    %cst_1 = arith.constant dense<0xFF800000> : vector<1xf32>
    %6 = vector.multi_reduction <maximumf>, %5, %cst_1 [1, 2] : vector<1x1x512xf32> to vector<1xf32>
    %7 = vector.shape_cast %6 : vector<1xf32> to vector<1x1x1xf32>
    %8 = vector.extract %7[0, 0, 0] : f32 from vector<1x1x1xf32>
    %c0_2 = arith.constant 0 : index
    %9 = memref.load %arg3[%c0_2] : memref<1xf32, #tpu.memory_space<smem>>
    memref.store %4, %arg3[%c0_2] : memref<1xf32, #tpu.memory_space<smem>>
    %c0_3 = arith.constant 0 : index
    %10 = memref.load %arg4[%c0_3] : memref<1xf32, #tpu.memory_space<smem>>
    memref.store %8, %arg4[%c0_3] : memref<1xf32, #tpu.memory_space<smem>>
    %cst_4 = arith.constant 0.000000e+00 : f32
    %11 = arith.minimumf %4, %cst_4 : f32
    %cst_5 = arith.constant 0.000000e+00 : f32
    %12 = arith.maximumf %8, %cst_5 : f32
    %13 = arith.subf %12, %11 : f32
    %cst_6 = arith.constant 2.540000e+02 : f32
    %14 = arith.divf %13, %cst_6 : f32
    %cst_7 = arith.constant 1.1920929E-7 : f32
    %15 = arith.maximumf %14, %cst_7 : f32
    %16 = arith.divf %11, %15 : f32
    %17 = math.roundeven %16 : f32
    %cst_8 = arith.constant -1.270000e+02 : f32
    %18 = arith.subf %cst_8, %17 : f32
    %cst_9 = arith.constant -1.270000e+02 : f32
    %cst_10 = arith.constant 1.270000e+02 : f32
    %19 = arith.maximumf %cst_9, %18 : f32
    %20 = arith.minimumf %cst_10, %19 : f32
    %cst_11 = arith.constant 1.000000e+00 : f32
    %21 = arith.divf %cst_11, %15 : f32
    %cst_12 = arith.constant -1.270000e+02 : f32
    %22 = arith.subf %cst_12, %20 : f32
    %cst_13 = arith.constant 1.270000e+02 : f32
    %23 = arith.subf %cst_13, %20 : f32
    %24 = vector.broadcast %21 : f32 to vector<1x512xf32>
    %25 = arith.mulf %0, %24 : vector<1x512xf32>
    %26 = math.roundeven %25 : vector<1x512xf32>
    %27 = vector.broadcast %22 : f32 to vector<1x512xf32>
    %28 = arith.maximumf %27, %26 : vector<1x512xf32>
    %29 = vector.broadcast %23 : f32 to vector<1x512xf32>
    %30 = arith.minimumf %29, %28 : vector<1x512xf32>
    %31 = vector.broadcast %15 : f32 to vector<1x512xf32>
    %32 = arith.mulf %30, %31 : vector<1x512xf32>
    %c0_14 = arith.constant 0 : index
    %c0_15 = arith.constant 0 : index
    %33 = vector.load %arg2[%c0_14, %c0_15] : memref<1x512xf32, #tpu.memory_space<vmem>>, vector<1x512xf32>
    tpu.vector_store %arg2[%c0_14, %c0_15], %32 {strides = array<i32>} : memref<1x512xf32, #tpu.memory_space<vmem>>, vector<1x512xf32>,
    return
  }
  func.func @transform_0(%arg0: i32) -> (i32, i32) {
    %c0_i32 = arith.constant 0 : i32
    %c0_i32_0 = arith.constant 0 : i32
    %c0_i32_1 = arith.constant 0 : i32
    return %c0_i32, %c0_i32_0 : i32, i32
  }
  func.func @transform_1(%arg0: i32) -> (i32, i32) {
    %c0_i32 = arith.constant 0 : i32
    %c0_i32_0 = arith.constant 0 : i32
    %c0_i32_1 = arith.constant 0 : i32
    return %c0_i32, %c0_i32_0 : i32, i32
  }
  func.func @transform_2(%arg0: i32) -> i32 {
    %c0_i32 = arith.constant 0 : i32
    %c0_i32_0 = arith.constant 0 : i32
    return %c0_i32 : i32
  }
  func.func @transform_3(%arg0: i32) -> i32 {
    %c0_i32 = arith.constant 0 : i32
    %c0_i32_0 = arith.constant 0 : i32
    return %c0_i32 : i32
  }
}

</mosaic_0001>

<bundles_post_ra>
// kernel: tpu_custom_call.1
= control target key start
LH: loop header
LB: loop body
LE: loop exit
PB: predicated region body
PF: predicated region fallthrough
CT: control target
= control target key end

     0   :  { %9 = vsyncpa [#allocation3], 0  ;;  %s343_s0 = inlined_call_operand.hbm [shape: f32[1,512], index: 0, kind: input, shape index: {}]   ;;  %s344_s1 = inlined_call_operand.hbm [shape: f32[1,512], index: 1, kind: output, shape index: {0}]   ;;  %s345_s2 = inlined_call_operand.hbm [shape: f32[1], index: 2, kind: output, shape index: {1}]   ;;  %s346_s3 = inlined_call_operand.hbm [shape: f32[1], index: 3, kind: output, shape index: {2}]  }
   0x1   :  { %10 = vsyncpa [#allocation4], 0 }
   0x2   :  { %11 = vsyncpa [#allocation5], 0 }
   0x3   :  { %12 = vsyncpa [#allocation9], 0  ;;  %s255_s12 = smov [#allocation2]   ;;  %s183_s16 = scalar_lea.hbm %s343_s0, 64 }
   0x4   :  { %s19_s13 = sshll.u32 %s255_s12, 4  ;;  %p184_p0 = scmp.ne.s32.totalorder %s343_s0, %s183_s16  ;;  %s20_s13 = int_to_ptr.vmem [resolvable:$true] %s19_s13 }
   0x5   :  { %p187_p1 = scmp.lt.u32.totalorder %s183_s16, %s343_s0 }
   0x7   :  { %p189_p2 = pnand %p187_p1, %p184_p0 }
   0x9   :  { %192 = shalt.err (!%p189_p2)
}
   0xa   :  { %s193_s21 = scalar_lea.vmem %s20_s13, 64  ;;  %p198_p4 = scmp.lt.s32.totalorder %s20_s13, %s20_s13 }
   0xb   :  { %p194_p3 = scmp.ne.s32.totalorder %s20_s13, %s193_s21  ;;  %p199_p5 = scmp.lt.s32.totalorder %s193_s21, %s193_s21 }
   0xd   :  { %p200_p6 = por %p199_p5, %p198_p4 }
   0xf   :  { %p201_p7 = pnand %p200_p6, %p194_p3 }
  0x11   :  { %204 = shalt.err (!%p201_p7)
}
  0x12   :  { %22 = dma.hbm_to_vmem [thread:$0]  %s343_s0, 64, %s20_s13, [#allocation3]  }
  0x13   :  { %247 = dma.done.wait [#allocation3], 64  }
  0x14   :  { %248 = vsyncadd [#allocation3], 4294967232  ;;  %v28_v0 = vlaneseq  ;;  %v296_v6 = vld [vmem:[#allocation2] sm:$0xf]  ;;  %vm48_vm0 = vcmask 1040384   ;;  %s205_s26 = scalar_lea.hbm %s345_s2, 16 }
  0x15   :  { %p206_p8 = scmp.ne.s32.totalorder %s345_s2, %s205_s26  ;;  %p209_p9 = scmp.lt.u32.totalorder %s205_s26, %s345_s2 }
  0x16   :  { %v29_v1 = vshrl.u32 %v28_v0, 7 }
  0x17   :  { %p211_p10 = pnand %p209_p9, %p206_p8 }
  0x18   :  { %v30_v2 = vsub.s32 0, %v29_v1  ;;  %v34_v3 = vsub.s32 1, %v29_v1  ;;  %v38_v4 = vsub.s32 2, %v29_v1  ;;  %v42_v5 = vsub.s32 3, %v29_v1 }
  0x1a   :  { %v31_v7 = vrot.slane %v296_v6, %v30_v2  ;;  %v35_v8 = vrot.slane %v296_v6, %v34_v3  ;;  %v39_v9 = vrot.slane %v296_v6, %v38_v4  ;;  %v43_v10 = vrot.slane %v296_v6, %v42_v5 }
  0x1c   :  { %v49_v11 = vsel %vm48_vm0, %v31_v7, inf  ;;  %v50_v12 = vsel %vm48_vm0, %v35_v8, inf  ;;  %v51_v13 = vsel %vm48_vm0, %v39_v9, inf  ;;  %v52_v14 = vsel %vm48_vm0, %v43_v10, inf }
  0x1d   :  { %v53_v15 = vmin.f32 %v49_v11, %v50_v12  ;;  %v54_v16 = vmin.f32 %v51_v13, %v52_v14  ;;  %v65_v17 = vsel %vm48_vm0, %v31_v7, -inf  ;;  %v66_v18 = vsel %vm48_vm0, %v35_v8, -inf }
  0x1e   :  { %v67_v19 = vsel %vm48_vm0, %v39_v9, -inf  ;;  %v68_v20 = vsel %vm48_vm0, %v43_v10, -inf  ;;  %v69_v21 = vmax.f32 %v65_v17, %v66_v18 }
  0x1f   :  { %v55_v22 = vmin.f32 %v53_v15, %v54_v16  ;;  %v70_v23 = vmax.f32 %v67_v19, %v68_v20 }
  0x21   :  { %56 = vmin.xlane.f32.xlu0 %v55_v22  ;;  %v71_v24 = vmax.f32 %v69_v21, %v70_v23 }
  0x25   :  { %72 = vmax.xlane.f32.xlu0 %v71_v24 }
  0xae   :  { %v57_v25 = vpop.xlane.xlu0 %56 }
  0xaf   :  { %v58_v26 = vrot.slane %v57_v25, 4 }
  0xb1   :  { %v59_v27 = vmin.f32 %v57_v25, %v58_v26 }
  0xb2   :  { %v73_v28 = vpop.xlane.xlu0 %72 }
  0xb3   :  { %v60_v29 = vrot.slane %v59_v27, 2  ;;  %v74_v30 = vrot.slane %v73_v28, 4 }
  0xb5   :  { %v75_v31 = vmax.f32 %v73_v28, %v74_v30  ;;  %v61_v32 = vmin.f32 %v59_v27, %v60_v29 }
  0xb7   :  { %v76_v33 = vrot.slane %v75_v31, 2  ;;  %v62_v34 = vrot.slane %v61_v32, 1 }
  0xb9   :  { %v77_v35 = vmax.f32 %v75_v31, %v76_v33  ;;  %v63_v36 = vmin.f32 %v61_v32, %v62_v34 }
  0xbb   :  { %166 = vpush %v63_v36  ;;  %v78_v37 = vrot.slane %v77_v35, 1 }
  0xbd   :  { %v79_v38 = vmax.f32 %v77_v35, %v78_v37 }
  0xbf   :  { %168 = vpush %v79_v38 }
  0xec   :  { %s167_s0 = spop %166 }
  0xed   :  { %82 = sst [smem:[#allocation7]] %s167_s0 }
  0xee   :  { %214 = shalt.err (!%p211_p10)
}
  0xef   :  { %s256_s4 = smov [#allocation7]   ;;  %s257_s7 = smov 0.0  }
  0xf0   :  { %143 = dma.smem_to_hbm %s256_s4, 16, %s345_s2, [#allocation5]  }
  0xf1   :  { %s85_s8 = smin.f32 %s257_s7, %s167_s0  ;;  %s169_s9 = spop %168 }
  0xf2   :  { %s86_s10 = smax.f32 %s257_s7, %s169_s9  ;;  %84 = sst [smem:[#allocation8]] %s169_s9 }
  0xf3   :  { %s87_s11 = ssub.f32 %s86_s10, %s85_s8  ;;  %s215_s14 = scalar_lea.hbm %s346_s3, 16 }
  0xf4   :  { %p216_p11 = scmp.ne.s32.totalorder %s346_s3, %s215_s14  ;;  %p219_p12 = scmp.lt.u32.totalorder %s215_s14, %s346_s3 }
  0xf6   :  { %p221_p13 = pnand %p219_p12, %p216_p11 }
  0xf8   :  { %224 = shalt.err (!%p221_p13)
}
  0xf9   :  { %s258_s2 = smov [#allocation8]   ;;  %s90_s21 = smul.f32 0.003937008, %s87_s11  ;;  %vm123_vm1 = vcmp.lt.s32.totalorder %v28_v0, 512 }
  0xfa   :  { %151 = dma.smem_to_hbm %s258_s2, 16, %s346_s3, [#allocation9]  }
  0xfb   :  { %s259_s22 = smov 1.1920929e-07   ;;  %s260_s4 = smov -127.0  }
  0xfc   :  { %s326_s23 = smax.f32 %s259_s22, %s90_s21  ;;  %s261_s6 = smov 127.0  }
  0xfd   :  { %v92_v39 = vstv %s326_s23 }
  0xfe   :  { %181 = vrcp.f32 %v92_v39 }
 0x108   :  { %v182_v40 = vpop.eup %181 }
 0x109   :  { %170 = vpush %v182_v40 }
 0x13a   :  { %s171_s0 = spop %170 }
 0x13b   :  { %s95_s24 = smul.f32 %s171_s0, %s85_s8  ;;  %v112_v41 = vstv %s171_s0  ;;  %s262_s8 = smov [#allocation6]  }
 0x13c   :  { %v113_v42 = vmul.f32 %v112_v41, %v296_v6  ;;  %s132_s11 = sshll.u32 %s262_s8, 4  ;;  %s133_s11 = int_to_ptr.vmem [resolvable:$true] %s132_s11 }
 0x13d   :  { %s96_s25 = scvt.f32.s32 %s95_s24  ;;  %s101_s26 = sand.u32 2147483647, %s95_s24 }
 0x13e   :  { %s99_s28 = sand.u32 2147483648, %s95_s24  ;;  %p102_p0 = scmp.lt.f32.partialorder %s101_s26, 2.1474836e+09  ;;  %v172_v43 = vround.rtne.f32 %v113_v42 }
 0x13f   :  { %s97_s27 = scvt.s32.f32 %s96_s25  ;;  %s225_s12 = scalar_lea.vmem %s133_s11, 64 }
 0x140   :  { %p226_p1 = scmp.ne.s32.totalorder %s133_s11, %s225_s12  ;;  %p230_p2 = scmp.lt.s32.totalorder %s133_s11, %s133_s11 }
 0x141   :  { %s98_s29 = sand.u32 2147483647, %s97_s27  ;;  %p231_p3 = scmp.lt.s32.totalorder %s225_s12, %s225_s12 }
 0x142   :  { %s100_s30 = sor.u32 %s99_s28, %s98_s29 }
 0x143   :  { %s348_s30 = smov (!%p102_p0, %s100_s30), %s95_s24  ;;  %p232_p4 = por %p231_p3, %p230_p2 }
 0x144   :  { %s104_s3 = ssub.f32 -127.0, %s348_s30 }
 0x145   :  { %p233_p5 = pnand %p232_p4, %p226_p1 }
 0x146   :  { %s105_s5 = smax.f32 %s260_s4, %s104_s3 }
 0x147   :  { %s106_s7 = smin.f32 %s261_s6, %s105_s5 }
 0x148   :  { %s110_s9 = ssub.f32 -127.0, %s106_s7 }
 0x149   :  { %s111_s10 = ssub.f32 127.0, %s106_s7 }
 0x14a   :  { %v115_v44 = vstv %s110_s9 }
 0x14b   :  { %v116_v45 = vmax.f32 %v115_v44, %v172_v43  ;;  %v117_v46 = vstv %s111_s10 }
 0x14d   :  { %v118_v47 = vmin.f32 %v117_v46, %v116_v45 }
 0x14f   :  { %v120_v48 = vmul.f32 %v118_v47, %v92_v39 }
 0x151   :  { %125 = vst.msk [vmem:[#allocation6] sm:$0xf] %vm123_vm1, %v120_v48 }
 0x152   :  { %236 = shalt.err (!%p233_p5)
}
 0x153   :  { %s237_s15 = scalar_lea.hbm %s344_s1, 64 }
 0x154   :  { %p238_p6 = scmp.ne.s32.totalorder %s344_s1, %s237_s15  ;;  %p241_p7 = scmp.lt.u32.totalorder %s237_s15, %s344_s1 }
 0x156   :  { %p243_p8 = pnand %p241_p7, %p238_p6 }
 0x158   :  { %246 = shalt.err (!%p243_p8)
}
 0x159   :  { %135 = dma.vmem_to_hbm [thread:$0]  %s133_s11, 64, %s344_s1, [#allocation4]  }
 0x15a   :  { %249 = dma.done.wait [#allocation4], 64  }
 0x15b   :  { %250 = vsyncadd [#allocation4], 4294967232 }
 0x15c   :  { %251 = dma.done.wait [#allocation5], 16  }
 0x15d   :  { %252 = vsyncadd [#allocation5], 4294967280 }
 0x15e   :  { %253 = dma.done.wait [#allocation9], 16  }
 0x15f   :  { %254 = vsyncadd [#allocation9], 4294967280 }
 0x160   :  { %161 = sfence }
 0x161   :  { %162 = vsyncpa [#allocation3], 1 }
 0x162   :  { %163 = vsyncpa [#allocation4], 1 }
 0x163   :  { %164 = vsyncpa [#allocation5], 1 }
 0x164   :  { %165 = vsyncpa [#allocation9], 1 }

</bundles_post_ra>
